<compile_context>
chip_gen: v5e
topology: v5e:2x2
jax: 0.10.0
libtpu: 0.0.40
codegen_flags: <defaults>
</compile_context>

<pallas_src>
import jax
import jax.numpy as jnp
from jax.experimental import pallas as pl
from jax.experimental.pallas import tpu as pltpu

IN_X = 2 * 6 * 7          # 84  (flattened board)
N_ACT = 7                 # number of actions (one-hot width in the torch model)
IN_DIM = IN_X + N_ACT     # 91
H1, H2, H3, H4 = 80, 10, 10, 1
W = H1                    # slab lane width (80)
TB = 8                    # states per grid step (batch tile, multiple of 8)

# Row offsets inside the packed weight slab (sections 8-row aligned where big).
R_W1X = 0                 # (84, 80)  W1[:, :84].T   (in -> sublane, out -> lane)
R_W1A = 88                # ( 7, 80)  W1[:, 84:].T + b1   (bias folded in)
R_W2T = 96                # (80, 10)  W2.T
R_W3T = 176               # (10, 10)  W3.T
R_B2  = 186               # ( 1, 10)  b2 row
R_B3  = 187               # ( 1, 10)  b3 row
R_W4  = 188               # ( 1, 10)  W4 torch-layout row
R_B4  = 189               # ( 1,  1)  b4
TOTAL_ROWS = 192          # multiple of 8


# ----------------------------------------------------------------------------
# Kernel: batched, all-actions forward
# ----------------------------------------------------------------------------
def _deepq_all_actions_kernel(x_ref,      # VMEM (TB, 84)  f32 : TB boards
                              w_ref,      # VMEM (192, 80) f32 : packed weights
                              out_ref):   # VMEM (TB, 7)   f32 : Q per action
    x = x_ref[...]                                                   # (TB, 84)

    # layer 1, shared part (MXU): x @ W1x^T -> (TB, 80)
    h1x = jnp.dot(x, w_ref[R_W1X:R_W1X + IN_X, :],
                  preferred_element_type=jnp.float32)

    # Small weights hoisted out of the action loop (loaded into vregs once).
    w2t = w_ref[R_W2T:R_W2T + H1, 0:H2]                              # (80, 10)
    w3t = w_ref[R_W3T:R_W3T + H2, 0:H3]                              # (10, 10)
    b2 = w_ref[R_B2:R_B2 + 1, 0:H2]                                  # (1, 10)
    b3 = w_ref[R_B3:R_B3 + 1, 0:H3]                                  # (1, 10)
    w4 = w_ref[R_W4:R_W4 + 1, 0:H3]                                  # (1, 10)
    b4 = w_ref[R_B4:R_B4 + 1, 0:1]                                   # (1, 1)

    lane = jax.lax.broadcasted_iota(jnp.int32, (1, N_ACT), 1)        # (1, 7)
    acc = jnp.zeros((TB, N_ACT), jnp.float32)

    # Unrolled over the 7 actions; one-hot matmul == adding the W1a row.
    for a in range(N_ACT):
        w1a = w_ref[R_W1A + a:R_W1A + a + 1, :]                      # (1, 80), b1 folded
        h1 = jnp.maximum(h1x + w1a, 0.0)                             # (TB, 80)
        h2 = jnp.maximum(
            jnp.dot(h1, w2t, preferred_element_type=jnp.float32) + b2, 0.0)
        h3 = jnp.maximum(
            jnp.dot(h2, w3t, preferred_element_type=jnp.float32) + b3, 0.0)
        # head: ReLU is intentional -- the torch module applies F.relu on l4.
        q = jnp.maximum(jnp.sum(h3 * w4, axis=-1, keepdims=True) + b4, 0.0)
        acc = acc + jnp.where(lane == a, q, 0.0)                     # place in lane a

    out_ref[...] = acc


# ----------------------------------------------------------------------------
# Parameter handling (all layout work happens ONCE here, not per call)
# ----------------------------------------------------------------------------
def init_params(key):
    """Deterministic init mimicking torch.nn.Linear defaults (torch layout)."""
    dims = [(IN_DIM, H1), (H1, H2), (H2, H3), (H3, H4)]
    params = []
    for fan_in, fan_out in dims:
        key, kw, kb = jax.random.split(key, 3)
        bound = 1.0 / jnp.sqrt(jnp.float32(fan_in))
        w = jax.random.uniform(kw, (fan_out, fan_in), jnp.float32, -bound, bound)
        b = jax.random.uniform(kb, (fan_out,), jnp.float32, -bound, bound)
        params.append((w, b))
    return params


def pack_params(params):
    """Pack all torch-layout weights into a single (192, 80) f32 VMEM slab."""
    (w1, b1), (w2, b2), (w3, b3), (w4, b4) = params
    slab = jnp.zeros((TOTAL_ROWS, W), jnp.float32)
    w1t = w1.T                                                       # (91, 80)
    slab = slab.at[R_W1X:R_W1X + IN_X, :].set(w1t[:IN_X])            # W1x^T
    slab = slab.at[R_W1A:R_W1A + N_ACT, :].set(w1t[IN_X:] + b1[None, :])  # W1a^T + b1
    slab = slab.at[R_W2T:R_W2T + H1, :H2].set(w2.T)                  # W2^T
    slab = slab.at[R_W3T:R_W3T + H2, :H3].set(w3.T)                  # W3^T
    slab = slab.at[R_B2, :H2].set(b2)
    slab = slab.at[R_B3, :H3].set(b3)
    slab = slab.at[R_W4, :H3].set(w4[0])
    slab = slab.at[R_B4, 0].set(b4[0])
    return slab


# ----------------------------------------------------------------------------
# Wrappers
# ----------------------------------------------------------------------------
def _deepq_batch_impl(packed_w, xs):
    """xs: (B, 2, 6, 7) or (B, 84) -> (B, 7) Q-values for every action."""
    xs = xs.reshape(xs.shape[0], -1).astype(jnp.float32)             # (B, 84)
    B = xs.shape[0]
    pad = (-B) % TB
    if pad:
        xs = jnp.concatenate([xs, jnp.zeros((pad, IN_X), jnp.float32)], axis=0)
    Bp = B + pad
    out = pl.pallas_call(
        _deepq_all_actions_kernel,
        out_shape=jax.ShapeDtypeStruct((Bp, N_ACT), jnp.float32),
        grid=(Bp // TB,),
        in_specs=[
            pl.BlockSpec((TB, IN_X), lambda i: (i, 0)),              # batch tile
            pl.BlockSpec((TOTAL_ROWS, W), lambda i: (0, 0)),         # resident slab
        ],
        out_specs=pl.BlockSpec((TB, N_ACT), lambda i: (i, 0)),       # lane-major Q
        compiler_params=pltpu.CompilerParams(
            dimension_semantics=("parallel",)),                      # 2x on v7x
    )(xs, packed_w)
    return out[:B]


deepq_forward_batch = jax.jit(_deepq_batch_impl)


def deepq_forward_all_actions(packed_w, x):
    """Single board (2, 6, 7) -> (7,) Q-values for all actions."""
    return deepq_forward_batch(packed_w, x.reshape(1, -1))[0]


def deepq_forward(packed_w, x, a):
    """Mirrors torch DeepQ.forward(x, a) -> shape (1,). `a` is clamped to [0,7)."""
    a = jnp.clip(jnp.asarray(a, jnp.int32), 0, N_ACT - 1)
    return deepq_forward_all_actions(packed_w, x)[a][None]


# ----------------------------------------------------------------------------
# Pure-JAX references (for correctness checks)
# ----------------------------------------------------------------------------
def deepq_reference(params, x, a):
    (w1, b1), (w2, b2), (w3, b3), (w4, b4) = params
    x_flat = x.reshape(1, -1).astype(jnp.float32)
    a_vec = jnp.zeros((1, N_ACT), jnp.float32).at[0, a].set(1.0)
    feat = jnp.concatenate([x_flat, a_vec], axis=1)
    l1 = jax.nn.relu(feat @ w1.T + b1)
    l2 = jax.nn.relu(l1 @ w2.T + b2)
    l3 = jax.nn.relu(l2 @ w3.T + b3)
    l4 = jax.nn.relu(l3 @ w4.T + b4)      # torch module applies ReLU on the head
    return l4.reshape(-1)


def deepq_reference_all(params, xs_flat):
    """xs_flat: (B, 84) -> (B, 7) Q-values for every action."""
    (w1, b1), (w2, b2), (w3, b3), (w4, b4) = params
    B = xs_flat.shape[0]
    eye = jnp.eye(N_ACT, dtype=jnp.float32)
    feat = jnp.concatenate([jnp.repeat(xs_flat, N_ACT, axis=0),
                            jnp.tile(eye, (B, 1))], axis=1)          # (B*7, 91)
    l1 = jax.nn.relu(feat @ w1.T + b1)
    l2 = jax.nn.relu(l1 @ w2.T + b2)
    l3 = jax.nn.relu(l2 @ w3.T + b3)
    l4 = jax.nn.relu(l3 @ w4.T + b4)
    return l4.reshape(B, N_ACT)


if __name__ == "__main__":
    key = jax.random.PRNGKey(0)
    kp, kx = jax.random.split(key)

    params = init_params(kp)
    packed = pack_params(params)                     # layout work done once

    # small batch of boards: 16 states of 2 planes x 6 x 7
    B = 16
    xs = jax.random.normal(kx, (B, 2, 6, 7), jnp.float32)

    # batched, all-actions forward (one pallas_call, grid over states)
    q = jax.block_until_ready(deepq_forward_batch(packed, xs))       # (16, 7)
    ref = deepq_reference_all(params, xs.reshape(B, -1))
    assert q.shape == (B, N_ACT) and q.dtype == jnp.float32
    assert jnp.allclose(q, ref, atol=1e-5, rtol=1e-5), (q, ref)

    # single (x, a) forward — mirrors the torch module exactly
    out = jax.block_until_ready(deepq_forward(packed, xs[0], 3))
    ref1 = deepq_reference(params, xs[0], 3)
    assert out.shape == (1,) and out.dtype == jnp.float32
    assert jnp.allclose(out, ref1, atol=1e-5, rtol=1e-5), (out, ref1)

    print("KERNEL_OK")
</pallas_src>

<mosaic_0001>
module attributes {stable_mosaic.version = 11 : i64} {
  func.func @_deepq_all_actions_kernel(%arg0: i32, %arg1: memref<8x84xf32, #tpu.memory_space<vmem>>, %arg2: memref<192x80xf32, #tpu.memory_space<vmem>>, %arg3: memref<8x7xf32, #tpu.memory_space<vmem>>) attributes {dimension_semantics = [#tpu.dimension_semantics<parallel>], iteration_bounds = array<i64: 2>, scalar_prefetch = 0 : i64, scratch_operands = 0 : i64, tpu.core_type = #tpu.core_type<tc>, window_params = [{transform_indices = @transform_0, window_bounds = array<i64: 8, 84>}, {pipeline_mode = #tpu.pipeline_mode<synchronous>, transform_indices = @transform_1, window_bounds = array<i64: 192, 80>}, {transform_indices = @transform_2, window_bounds = array<i64: 8, 7>}]} {
    %c0 = arith.constant 0 : index
    %c0_0 = arith.constant 0 : index
    %0 = vector.load %arg1[%c0, %c0_0] : memref<8x84xf32, #tpu.memory_space<vmem>>, vector<8x84xf32>
    %c0_1 = arith.constant 0 : index
    %c0_2 = arith.constant 0 : index
    %1 = vector.load %arg2[%c0_1, %c0_2] : memref<192x80xf32, #tpu.memory_space<vmem>>, vector<84x80xf32>
    %cst = arith.constant dense<0.000000e+00> : vector<8x80xf32>
    %2 = tpu.matmul %0, %1, %cst {dimension_numbers = #tpu.dot_dimension_numbers<[1], [0], [0], [1], [0, 0, 1, 1], [], []>} : vector<8x84xf32>, vector<84x80xf32>, vector<8x80xf32> -> vector<8x80xf32>
    %c96 = arith.constant 96 : index
    %c0_3 = arith.constant 0 : index
    %3 = vector.load %arg2[%c96, %c0_3] : memref<192x80xf32, #tpu.memory_space<vmem>>, vector<80x10xf32>
    %c176 = arith.constant 176 : index
    %c0_4 = arith.constant 0 : index
    %4 = vector.load %arg2[%c176, %c0_4] : memref<192x80xf32, #tpu.memory_space<vmem>>, vector<10x10xf32>
    %c186 = arith.constant 186 : index
    %c0_5 = arith.constant 0 : index
    %5 = vector.load %arg2[%c186, %c0_5] : memref<192x80xf32, #tpu.memory_space<vmem>>, vector<1x10xf32>
    %c187 = arith.constant 187 : index
    %c0_6 = arith.constant 0 : index
    %6 = vector.load %arg2[%c187, %c0_6] : memref<192x80xf32, #tpu.memory_space<vmem>>, vector<1x10xf32>
    %c188 = arith.constant 188 : index
    %c0_7 = arith.constant 0 : index
    %7 = vector.load %arg2[%c188, %c0_7] : memref<192x80xf32, #tpu.memory_space<vmem>>, vector<1x10xf32>
    %c189 = arith.constant 189 : index
    %c0_8 = arith.constant 0 : index
    %8 = vector.load %arg2[%c189, %c0_8] : memref<192x80xf32, #tpu.memory_space<vmem>>, vector<1x1xf32>
    %9 = tpu.iota {dimensions = array<i32: 1>} : vector<1x7xi32>
    %cst_9 = arith.constant 0.000000e+00 : f32
    %10 = vector.broadcast %cst_9 : f32 to vector<8x7xf32>
    %c88 = arith.constant 88 : index
    %c0_10 = arith.constant 0 : index
    %11 = vector.load %arg2[%c88, %c0_10] : memref<192x80xf32, #tpu.memory_space<vmem>>, vector<1x80xf32>
    %12 = vector.broadcast %11 : vector<1x80xf32> to vector<8x80xf32>
    %13 = arith.addf %2, %12 : vector<8x80xf32>
    %cst_11 = arith.constant 0.000000e+00 : f32
    %14 = vector.broadcast %cst_11 : f32 to vector<8x80xf32>
    %15 = arith.maximumf %13, %14 : vector<8x80xf32>
    %cst_12 = arith.constant dense<0.000000e+00> : vector<8x10xf32>
    %16 = tpu.matmul %15, %3, %cst_12 {dimension_numbers = #tpu.dot_dimension_numbers<[1], [0], [0], [1], [0, 0, 1, 1], [], []>} : vector<8x80xf32>, vector<80x10xf32>, vector<8x10xf32> -> vector<8x10xf32>
    %17 = vector.broadcast %5 : vector<1x10xf32> to vector<8x10xf32>
    %18 = arith.addf %16, %17 : vector<8x10xf32>
    %cst_13 = arith.constant 0.000000e+00 : f32
    %19 = vector.broadcast %cst_13 : f32 to vector<8x10xf32>
    %20 = arith.maximumf %18, %19 : vector<8x10xf32>
    %cst_14 = arith.constant dense<0.000000e+00> : vector<8x10xf32>
    %21 = tpu.matmul %20, %4, %cst_14 {dimension_numbers = #tpu.dot_dimension_numbers<[1], [0], [0], [1], [0, 0, 1, 1], [], []>} : vector<8x10xf32>, vector<10x10xf32>, vector<8x10xf32> -> vector<8x10xf32>
    %22 = vector.broadcast %6 : vector<1x10xf32> to vector<8x10xf32>
    %23 = arith.addf %21, %22 : vector<8x10xf32>
    %cst_15 = arith.constant 0.000000e+00 : f32
    %24 = vector.broadcast %cst_15 : f32 to vector<8x10xf32>
    %25 = arith.maximumf %23, %24 : vector<8x10xf32>
    %26 = vector.broadcast %7 : vector<1x10xf32> to vector<8x10xf32>
    %27 = arith.mulf %25, %26 : vector<8x10xf32>
    %cst_16 = arith.constant dense<0.000000e+00> : vector<8xf32>
    %28 = vector.multi_reduction <add>, %27, %cst_16 [1] : vector<8x10xf32> to vector<8xf32>
    %29 = vector.shape_cast %28 : vector<8xf32> to vector<8x1xf32>
    %30 = vector.broadcast %8 : vector<1x1xf32> to vector<8x1xf32>
    %31 = arith.addf %29, %30 : vector<8x1xf32>
    %cst_17 = arith.constant 0.000000e+00 : f32
    %32 = vector.broadcast %cst_17 : f32 to vector<8x1xf32>
    %33 = arith.maximumf %31, %32 : vector<8x1xf32>
    %c0_i32 = arith.constant 0 : i32
    %34 = vector.broadcast %c0_i32 : i32 to vector<1x7xi32>
    %35 = arith.cmpi eq, %9, %34 : vector<1x7xi32>
    %cst_18 = arith.constant 0.000000e+00 : f32
    %36 = vector.shape_cast %35 : vector<1x7xi1> to vector<1x7xi1>
    %37 = vector.broadcast %36 : vector<1x7xi1> to vector<8x7xi1>
    %38 = vector.shape_cast %33 : vector<8x1xf32> to vector<8x1xf32>
    %39 = vector.broadcast %38 : vector<8x1xf32> to vector<8x7xf32>
    %40 = vector.broadcast %cst_18 : f32 to vector<8x7xf32>
    %41 = arith.select %37, %39, %40 : vector<8x7xi1>, vector<8x7xf32>
    %42 = arith.addf %10, %41 : vector<8x7xf32>
    %c89 = arith.constant 89 : index
    %c0_19 = arith.constant 0 : index
    %43 = vector.load %arg2[%c89, %c0_19] : memref<192x80xf32, #tpu.memory_space<vmem>>, vector<1x80xf32>
    %44 = vector.broadcast %43 : vector<1x80xf32> to vector<8x80xf32>
    %45 = arith.addf %2, %44 : vector<8x80xf32>
    %cst_20 = arith.constant 0.000000e+00 : f32
    %46 = vector.broadcast %cst_20 : f32 to vector<8x80xf32>
    %47 = arith.maximumf %45, %46 : vector<8x80xf32>
    %cst_21 = arith.constant dense<0.000000e+00> : vector<8x10xf32>
    %48 = tpu.matmul %47, %3, %cst_21 {dimension_numbers = #tpu.dot_dimension_numbers<[1], [0], [0], [1], [0, 0, 1, 1], [], []>} : vector<8x80xf32>, vector<80x10xf32>, vector<8x10xf32> -> vector<8x10xf32>
    %49 = vector.broadcast %5 : vector<1x10xf32> to vector<8x10xf32>
    %50 = arith.addf %48, %49 : vector<8x10xf32>
    %cst_22 = arith.constant 0.000000e+00 : f32
    %51 = vector.broadcast %cst_22 : f32 to vector<8x10xf32>
    %52 = arith.maximumf %50, %51 : vector<8x10xf32>
    %cst_23 = arith.constant dense<0.000000e+00> : vector<8x10xf32>
    %53 = tpu.matmul %52, %4, %cst_23 {dimension_numbers = #tpu.dot_dimension_numbers<[1], [0], [0], [1], [0, 0, 1, 1], [], []>} : vector<8x10xf32>, vector<10x10xf32>, vector<8x10xf32> -> vector<8x10xf32>
    %54 = vector.broadcast %6 : vector<1x10xf32> to vector<8x10xf32>
    %55 = arith.addf %53, %54 : vector<8x10xf32>
    %cst_24 = arith.constant 0.000000e+00 : f32
    %56 = vector.broadcast %cst_24 : f32 to vector<8x10xf32>
    %57 = arith.maximumf %55, %56 : vector<8x10xf32>
    %58 = vector.broadcast %7 : vector<1x10xf32> to vector<8x10xf32>
    %59 = arith.mulf %57, %58 : vector<8x10xf32>
    %cst_25 = arith.constant dense<0.000000e+00> : vector<8xf32>
    %60 = vector.multi_reduction <add>, %59, %cst_25 [1] : vector<8x10xf32> to vector<8xf32>
    %61 = vector.shape_cast %60 : vector<8xf32> to vector<8x1xf32>
    %62 = vector.broadcast %8 : vector<1x1xf32> to vector<8x1xf32>
    %63 = arith.addf %61, %62 : vector<8x1xf32>
    %cst_26 = arith.constant 0.000000e+00 : f32
    %64 = vector.broadcast %cst_26 : f32 to vector<8x1xf32>
    %65 = arith.maximumf %63, %64 : vector<8x1xf32>
    %c1_i32 = arith.constant 1 : i32
    %66 = vector.broadcast %c1_i32 : i32 to vector<1x7xi32>
    %67 = arith.cmpi eq, %9, %66 : vector<1x7xi32>
    %cst_27 = arith.constant 0.000000e+00 : f32
    %68 = vector.shape_cast %67 : vector<1x7xi1> to vector<1x7xi1>
    %69 = vector.broadcast %68 : vector<1x7xi1> to vector<8x7xi1>
    %70 = vector.shape_cast %65 : vector<8x1xf32> to vector<8x1xf32>
    %71 = vector.broadcast %70 : vector<8x1xf32> to vector<8x7xf32>
    %72 = vector.broadcast %cst_27 : f32 to vector<8x7xf32>
    %73 = arith.select %69, %71, %72 : vector<8x7xi1>, vector<8x7xf32>
    %74 = arith.addf %42, %73 : vector<8x7xf32>
    %c90 = arith.constant 90 : index
    %c0_28 = arith.constant 0 : index
    %75 = vector.load %arg2[%c90, %c0_28] : memref<192x80xf32, #tpu.memory_space<vmem>>, vector<1x80xf32>
    %76 = vector.broadcast %75 : vector<1x80xf32> to vector<8x80xf32>
    %77 = arith.addf %2, %76 : vector<8x80xf32>
    %cst_29 = arith.constant 0.000000e+00 : f32
    %78 = vector.broadcast %cst_29 : f32 to vector<8x80xf32>
    %79 = arith.maximumf %77, %78 : vector<8x80xf32>
    %cst_30 = arith.constant dense<0.000000e+00> : vector<8x10xf32>
    %80 = tpu.matmul %79, %3, %cst_30 {dimension_numbers = #tpu.dot_dimension_numbers<[1], [0], [0], [1], [0, 0, 1, 1], [], []>} : vector<8x80xf32>, vector<80x10xf32>, vector<8x10xf32> -> vector<8x10xf32>
    %81 = vector.broadcast %5 : vector<1x10xf32> to vector<8x10xf32>
    %82 = arith.addf %80, %81 : vector<8x10xf32>
    %cst_31 = arith.constant 0.000000e+00 : f32
    %83 = vector.broadcast %cst_31 : f32 to vector<8x10xf32>
    %84 = arith.maximumf %82, %83 : vector<8x10xf32>
    %cst_32 = arith.constant dense<0.000000e+00> : vector<8x10xf32>
    %85 = tpu.matmul %84, %4, %cst_32 {dimension_numbers = #tpu.dot_dimension_numbers<[1], [0], [0], [1], [0, 0, 1, 1], [], []>} : vector<8x10xf32>, vector<10x10xf32>, vector<8x10xf32> -> vector<8x10xf32>
    %86 = vector.broadcast %6 : vector<1x10xf32> to vector<8x10xf32>
    %87 = arith.addf %85, %86 : vector<8x10xf32>
    %cst_33 = arith.constant 0.000000e+00 : f32
    %88 = vector.broadcast %cst_33 : f32 to vector<8x10xf32>
    %89 = arith.maximumf %87, %88 : vector<8x10xf32>
    %90 = vector.broadcast %7 : vector<1x10xf32> to vector<8x10xf32>
    %91 = arith.mulf %89, %90 : vector<8x10xf32>
    %cst_34 = arith.constant dense<0.000000e+00> : vector<8xf32>
    %92 = vector.multi_reduction <add>, %91, %cst_34 [1] : vector<8x10xf32> to vector<8xf32>
    %93 = vector.shape_cast %92 : vector<8xf32> to vector<8x1xf32>
    %94 = vector.broadcast %8 : vector<1x1xf32> to vector<8x1xf32>
    %95 = arith.addf %93, %94 : vector<8x1xf32>
    %cst_35 = arith.constant 0.000000e+00 : f32
    %96 = vector.broadcast %cst_35 : f32 to vector<8x1xf32>
    %97 = arith.maximumf %95, %96 : vector<8x1xf32>
    %c2_i32 = arith.constant 2 : i32
    %98 = vector.broadcast %c2_i32 : i32 to vector<1x7xi32>
    %99 = arith.cmpi eq, %9, %98 : vector<1x7xi32>
    %cst_36 = arith.constant 0.000000e+00 : f32
    %100 = vector.shape_cast %99 : vector<1x7xi1> to vector<1x7xi1>
    %101 = vector.broadcast %100 : vector<1x7xi1> to vector<8x7xi1>
    %102 = vector.shape_cast %97 : vector<8x1xf32> to vector<8x1xf32>
    %103 = vector.broadcast %102 : vector<8x1xf32> to vector<8x7xf32>
    %104 = vector.broadcast %cst_36 : f32 to vector<8x7xf32>
    %105 = arith.select %101, %103, %104 : vector<8x7xi1>, vector<8x7xf32>
    %106 = arith.addf %74, %105 : vector<8x7xf32>
    %c91 = arith.constant 91 : index
    %c0_37 = arith.constant 0 : index
    %107 = vector.load %arg2[%c91, %c0_37] : memref<192x80xf32, #tpu.memory_space<vmem>>, vector<1x80xf32>
    %108 = vector.broadcast %107 : vector<1x80xf32> to vector<8x80xf32>
    %109 = arith.addf %2, %108 : vector<8x80xf32>
    %cst_38 = arith.constant 0.000000e+00 : f32
    %110 = vector.broadcast %cst_38 : f32 to vector<8x80xf32>
    %111 = arith.maximumf %109, %110 : vector<8x80xf32>
    %cst_39 = arith.constant dense<0.000000e+00> : vector<8x10xf32>
    %112 = tpu.matmul %111, %3, %cst_39 {dimension_numbers = #tpu.dot_dimension_numbers<[1], [0], [0], [1], [0, 0, 1, 1], [], []>} : vector<8x80xf32>, vector<80x10xf32>, vector<8x10xf32> -> vector<8x10xf32>
    %113 = vector.broadcast %5 : vector<1x10xf32> to vector<8x10xf32>
    %114 = arith.addf %112, %113 : vector<8x10xf32>
    %cst_40 = arith.constant 0.000000e+00 : f32
    %115 = vector.broadcast %cst_40 : f32 to vector<8x10xf32>
    %116 = arith.maximumf %114, %115 : vector<8x10xf32>
    %cst_41 = arith.constant dense<0.000000e+00> : vector<8x10xf32>
    %117 = tpu.matmul %116, %4, %cst_41 {dimension_numbers = #tpu.dot_dimension_numbers<[1], [0], [0], [1], [0, 0, 1, 1], [], []>} : vector<8x10xf32>, vector<10x10xf32>, vector<8x10xf32> -> vector<8x10xf32>
    %118 = vector.broadcast %6 : vector<1x10xf32> to vector<8x10xf32>
    %119 = arith.addf %117, %118 : vector<8x10xf32>
    %cst_42 = arith.constant 0.000000e+00 : f32
    %120 = vector.broadcast %cst_42 : f32 to vector<8x10xf32>
    %121 = arith.maximumf %119, %120 : vector<8x10xf32>
    %122 = vector.broadcast %7 : vector<1x10xf32> to vector<8x10xf32>
    %123 = arith.mulf %121, %122 : vector<8x10xf32>
    %cst_43 = arith.constant dense<0.000000e+00> : vector<8xf32>
    %124 = vector.multi_reduction <add>, %123, %cst_43 [1] : vector<8x10xf32> to vector<8xf32>
    %125 = vector.shape_cast %124 : vector<8xf32> to vector<8x1xf32>
    %126 = vector.broadcast %8 : vector<1x1xf32> to vector<8x1xf32>
    %127 = arith.addf %125, %126 : vector<8x1xf32>
    %cst_44 = arith.constant 0.000000e+00 : f32
    %128 = vector.broadcast %cst_44 : f32 to vector<8x1xf32>
    %129 = arith.maximumf %127, %128 : vector<8x1xf32>
    %c3_i32 = arith.constant 3 : i32
    %130 = vector.broadcast %c3_i32 : i32 to vector<1x7xi32>
    %131 = arith.cmpi eq, %9, %130 : vector<1x7xi32>
    %cst_45 = arith.constant 0.000000e+00 : f32
    %132 = vector.shape_cast %131 : vector<1x7xi1> to vector<1x7xi1>
    %133 = vector.broadcast %132 : vector<1x7xi1> to vector<8x7xi1>
    %134 = vector.shape_cast %129 : vector<8x1xf32> to vector<8x1xf32>
    %135 = vector.broadcast %134 : vector<8x1xf32> to vector<8x7xf32>
    %136 = vector.broadcast %cst_45 : f32 to vector<8x7xf32>
    %137 = arith.select %133, %135, %136 : vector<8x7xi1>, vector<8x7xf32>
    %138 = arith.addf %106, %137 : vector<8x7xf32>
    %c92 = arith.constant 92 : index
    %c0_46 = arith.constant 0 : index
    %139 = vector.load %arg2[%c92, %c0_46] : memref<192x80xf32, #tpu.memory_space<vmem>>, vector<1x80xf32>
    %140 = vector.broadcast %139 : vector<1x80xf32> to vector<8x80xf32>
    %141 = arith.addf %2, %140 : vector<8x80xf32>
    %cst_47 = arith.constant 0.000000e+00 : f32
    %142 = vector.broadcast %cst_47 : f32 to vector<8x80xf32>
    %143 = arith.maximumf %141, %142 : vector<8x80xf32>
    %cst_48 = arith.constant dense<0.000000e+00> : vector<8x10xf32>
    %144 = tpu.matmul %143, %3, %cst_48 {dimension_numbers = #tpu.dot_dimension_numbers<[1], [0], [0], [1], [0, 0, 1, 1], [], []>} : vector<8x80xf32>, vector<80x10xf32>, vector<8x10xf32> -> vector<8x10xf32>
    %145 = vector.broadcast %5 : vector<1x10xf32> to vector<8x10xf32>
    %146 = arith.addf %144, %145 : vector<8x10xf32>
    %cst_49 = arith.constant 0.000000e+00 : f32
    %147 = vector.broadcast %cst_49 : f32 to vector<8x10xf32>
    %148 = arith.maximumf %146, %147 : vector<8x10xf32>
    %cst_50 = arith.constant dense<0.000000e+00> : vector<8x10xf32>
    %149 = tpu.matmul %148, %4, %cst_50 {dimension_numbers = #tpu.dot_dimension_numbers<[1], [0], [0], [1], [0, 0, 1, 1], [], []>} : vector<8x10xf32>, vector<10x10xf32>, vector<8x10xf32> -> vector<8x10xf32>
    %150 = vector.broadcast %6 : vector<1x10xf32> to vector<8x10xf32>
    %151 = arith.addf %149, %150 : vector<8x10xf32>
    %cst_51 = arith.constant 0.000000e+00 : f32
    %152 = vector.broadcast %cst_51 : f32 to vector<8x10xf32>
    %153 = arith.maximumf %151, %152 : vector<8x10xf32>
    %154 = vector.broadcast %7 : vector<1x10xf32> to vector<8x10xf32>
    %155 = arith.mulf %153, %154 : vector<8x10xf32>
    %cst_52 = arith.constant dense<0.000000e+00> : vector<8xf32>
    %156 = vector.multi_reduction <add>, %155, %cst_52 [1] : vector<8x10xf32> to vector<8xf32>
    %157 = vector.shape_cast %156 : vector<8xf32> to vector<8x1xf32>
    %158 = vector.broadcast %8 : vector<1x1xf32> to vector<8x1xf32>
    %159 = arith.addf %157, %158 : vector<8x1xf32>
    %cst_53 = arith.constant 0.000000e+00 : f32
    %160 = vector.broadcast %cst_53 : f32 to vector<8x1xf32>
    %161 = arith.maximumf %159, %160 : vector<8x1xf32>
    %c4_i32 = arith.constant 4 : i32
    %162 = vector.broadcast %c4_i32 : i32 to vector<1x7xi32>
    %163 = arith.cmpi eq, %9, %162 : vector<1x7xi32>
    %cst_54 = arith.constant 0.000000e+00 : f32
    %164 = vector.shape_cast %163 : vector<1x7xi1> to vector<1x7xi1>
    %165 = vector.broadcast %164 : vector<1x7xi1> to vector<8x7xi1>
    %166 = vector.shape_cast %161 : vector<8x1xf32> to vector<8x1xf32>
    %167 = vector.broadcast %166 : vector<8x1xf32> to vector<8x7xf32>
    %168 = vector.broadcast %cst_54 : f32 to vector<8x7xf32>
    %169 = arith.select %165, %167, %168 : vector<8x7xi1>, vector<8x7xf32>
    %170 = arith.addf %138, %169 : vector<8x7xf32>
    %c93 = arith.constant 93 : index
    %c0_55 = arith.constant 0 : index
    %171 = vector.load %arg2[%c93, %c0_55] : memref<192x80xf32, #tpu.memory_space<vmem>>, vector<1x80xf32>
    %172 = vector.broadcast %171 : vector<1x80xf32> to vector<8x80xf32>
    %173 = arith.addf %2, %172 : vector<8x80xf32>
    %cst_56 = arith.constant 0.000000e+00 : f32
    %174 = vector.broadcast %cst_56 : f32 to vector<8x80xf32>
    %175 = arith.maximumf %173, %174 : vector<8x80xf32>
    %cst_57 = arith.constant dense<0.000000e+00> : vector<8x10xf32>
    %176 = tpu.matmul %175, %3, %cst_57 {dimension_numbers = #tpu.dot_dimension_numbers<[1], [0], [0], [1], [0, 0, 1, 1], [], []>} : vector<8x80xf32>, vector<80x10xf32>, vector<8x10xf32> -> vector<8x10xf32>
    %177 = vector.broadcast %5 : vector<1x10xf32> to vector<8x10xf32>
    %178 = arith.addf %176, %177 : vector<8x10xf32>
    %cst_58 = arith.constant 0.000000e+00 : f32
    %179 = vector.broadcast %cst_58 : f32 to vector<8x10xf32>
    %180 = arith.maximumf %178, %179 : vector<8x10xf32>
    %cst_59 = arith.constant dense<0.000000e+00> : vector<8x10xf32>
    %181 = tpu.matmul %180, %4, %cst_59 {dimension_numbers = #tpu.dot_dimension_numbers<[1], [0], [0], [1], [0, 0, 1, 1], [], []>} : vector<8x10xf32>, vector<10x10xf32>, vector<8x10xf32> -> vector<8x10xf32>
    %182 = vector.broadcast %6 : vector<1x10xf32> to vector<8x10xf32>
    %183 = arith.addf %181, %182 : vector<8x10xf32>
    %cst_60 = arith.constant 0.000000e+00 : f32
    %184 = vector.broadcast %cst_60 : f32 to vector<8x10xf32>
    %185 = arith.maximumf %183, %184 : vector<8x10xf32>
    %186 = vector.broadcast %7 : vector<1x10xf32> to vector<8x10xf32>
    %187 = arith.mulf %185, %186 : vector<8x10xf32>
    %cst_61 = arith.constant dense<0.000000e+00> : vector<8xf32>
    %188 = vector.multi_reduction <add>, %187, %cst_61 [1] : vector<8x10xf32> to vector<8xf32>
    %189 = vector.shape_cast %188 : vector<8xf32> to vector<8x1xf32>
    %190 = vector.broadcast %8 : vector<1x1xf32> to vector<8x1xf32>
    %191 = arith.addf %189, %190 : vector<8x1xf32>
    %cst_62 = arith.constant 0.000000e+00 : f32
    %192 = vector.broadcast %cst_62 : f32 to vector<8x1xf32>
    %193 = arith.maximumf %191, %192 : vector<8x1xf32>
    %c5_i32 = arith.constant 5 : i32
    %194 = vector.broadcast %c5_i32 : i32 to vector<1x7xi32>
    %195 = arith.cmpi eq, %9, %194 : vector<1x7xi32>
    %cst_63 = arith.constant 0.000000e+00 : f32
    %196 = vector.shape_cast %195 : vector<1x7xi1> to vector<1x7xi1>
    %197 = vector.broadcast %196 : vector<1x7xi1> to vector<8x7xi1>
    %198 = vector.shape_cast %193 : vector<8x1xf32> to vector<8x1xf32>
    %199 = vector.broadcast %198 : vector<8x1xf32> to vector<8x7xf32>
    %200 = vector.broadcast %cst_63 : f32 to vector<8x7xf32>
    %201 = arith.select %197, %199, %200 : vector<8x7xi1>, vector<8x7xf32>
    %202 = arith.addf %170, %201 : vector<8x7xf32>
    %c94 = arith.constant 94 : index
    %c0_64 = arith.constant 0 : index
    %203 = vector.load %arg2[%c94, %c0_64] : memref<192x80xf32, #tpu.memory_space<vmem>>, vector<1x80xf32>
    %204 = vector.broadcast %203 : vector<1x80xf32> to vector<8x80xf32>
    %205 = arith.addf %2, %204 : vector<8x80xf32>
    %cst_65 = arith.constant 0.000000e+00 : f32
    %206 = vector.broadcast %cst_65 : f32 to vector<8x80xf32>
    %207 = arith.maximumf %205, %206 : vector<8x80xf32>
    %cst_66 = arith.constant dense<0.000000e+00> : vector<8x10xf32>
    %208 = tpu.matmul %207, %3, %cst_66 {dimension_numbers = #tpu.dot_dimension_numbers<[1], [0], [0], [1], [0, 0, 1, 1], [], []>} : vector<8x80xf32>, vector<80x10xf32>, vector<8x10xf32> -> vector<8x10xf32>
    %209 = vector.broadcast %5 : vector<1x10xf32> to vector<8x10xf32>
    %210 = arith.addf %208, %209 : vector<8x10xf32>
    %cst_67 = arith.constant 0.000000e+00 : f32
    %211 = vector.broadcast %cst_67 : f32 to vector<8x10xf32>
    %212 = arith.maximumf %210, %211 : vector<8x10xf32>
    %cst_68 = arith.constant dense<0.000000e+00> : vector<8x10xf32>
    %213 = tpu.matmul %212, %4, %cst_68 {dimension_numbers = #tpu.dot_dimension_numbers<[1], [0], [0], [1], [0, 0, 1, 1], [], []>} : vector<8x10xf32>, vector<10x10xf32>, vector<8x10xf32> -> vector<8x10xf32>
    %214 = vector.broadcast %6 : vector<1x10xf32> to vector<8x10xf32>
    %215 = arith.addf %213, %214 : vector<8x10xf32>
    %cst_69 = arith.constant 0.000000e+00 : f32
    %216 = vector.broadcast %cst_69 : f32 to vector<8x10xf32>
    %217 = arith.maximumf %215, %216 : vector<8x10xf32>
    %218 = vector.broadcast %7 : vector<1x10xf32> to vector<8x10xf32>
    %219 = arith.mulf %217, %218 : vector<8x10xf32>
    %cst_70 = arith.constant dense<0.000000e+00> : vector<8xf32>
    %220 = vector.multi_reduction <add>, %219, %cst_70 [1] : vector<8x10xf32> to vector<8xf32>
    %221 = vector.shape_cast %220 : vector<8xf32> to vector<8x1xf32>
    %222 = vector.broadcast %8 : vector<1x1xf32> to vector<8x1xf32>
    %223 = arith.addf %221, %222 : vector<8x1xf32>
    %cst_71 = arith.constant 0.000000e+00 : f32
    %224 = vector.broadcast %cst_71 : f32 to vector<8x1xf32>
    %225 = arith.maximumf %223, %224 : vector<8x1xf32>
    %c6_i32 = arith.constant 6 : i32
    %226 = vector.broadcast %c6_i32 : i32 to vector<1x7xi32>
    %227 = arith.cmpi eq, %9, %226 : vector<1x7xi32>
    %cst_72 = arith.constant 0.000000e+00 : f32
    %228 = vector.shape_cast %227 : vector<1x7xi1> to vector<1x7xi1>
    %229 = vector.broadcast %228 : vector<1x7xi1> to vector<8x7xi1>
    %230 = vector.shape_cast %225 : vector<8x1xf32> to vector<8x1xf32>
    %231 = vector.broadcast %230 : vector<8x1xf32> to vector<8x7xf32>
    %232 = vector.broadcast %cst_72 : f32 to vector<8x7xf32>
    %233 = arith.select %229, %231, %232 : vector<8x7xi1>, vector<8x7xf32>
    %234 = arith.addf %202, %233 : vector<8x7xf32>
    %c0_73 = arith.constant 0 : index
    %c0_74 = arith.constant 0 : index
    %235 = vector.load %arg3[%c0_73, %c0_74] : memref<8x7xf32, #tpu.memory_space<vmem>>, vector<8x7xf32>
    tpu.vector_store %arg3[%c0_73, %c0_74], %234 {strides = array<i32>} : memref<8x7xf32, #tpu.memory_space<vmem>>, vector<8x7xf32>,
    return
  }
  func.func @transform_0(%arg0: i32) -> (i32, i32) {
    %c0_i32 = arith.constant 0 : i32
    %c0_i32_0 = arith.constant 0 : i32
    return %arg0, %c0_i32 : i32, i32
  }
  func.func @transform_1(%arg0: i32) -> (i32, i32) {
    %c0_i32 = arith.constant 0 : i32
    %c0_i32_0 = arith.constant 0 : i32
    %c0_i32_1 = arith.constant 0 : i32
    return %c0_i32, %c0_i32_0 : i32, i32
  }
  func.func @transform_2(%arg0: i32) -> (i32, i32) {
    %c0_i32 = arith.constant 0 : i32
    %c0_i32_0 = arith.constant 0 : i32
    return %arg0, %c0_i32 : i32, i32
  }
}

</mosaic_0001>

<bundles_post_ra>
// kernel: _deepq_batch_impl.1
= control target key start
LH: loop header
LB: loop body
LE: loop exit
PB: predicated region body
PF: predicated region fallthrough
CT: control target
= control target key end

     0   :  { %s817_s9 = smov 0   ;;  %s1130_s0 = inlined_call_operand.vmem [shape: f32[16,84], index: 0, kind: input, shape index: {}]   ;;  %s1131_s1 = inlined_call_operand.vmem [shape: f32[192,80], index: 1, kind: input, shape index: {}]   ;;  %s1132_s2 = inlined_call_operand.vmem [shape: f32[16,7], index: 2, kind: output, shape index: {}]  }
   0x1 LB: > { %s738_s10 = sadd.s32 4294967295, %s799_s9   ;;  %p742_p0 = scmp.ge.s32.totalorder %s799_s9, 1  ;;  %s799_s9 = sphi %s817_s9, %s12_s9  }
   0x2   : > { %p111_p1 = scmp.lt.s32.totalorder %s799_s9, 3 }
   0x4   : > { %p112_p2 = pnand %p742_p0, %p111_p1 }
   0x5   : > { %p834_p3 = scmp.lt.s32.totalorder (!%p112_p2), %s738_s10, 1 }
   0x6   : > { %115 = sbr.rel (%p112_p2) target bundleno = 982 (0x3d6), region = 28 }
   0xb   : > { %v150_v0 = vld [vmem:[%s1131_s1 + $0x50] sm:$0xf]  ;;  %vm155_vm0 = vcmask 1043456   ;;  %v149_v1 = vld [vmem:[%s1131_s1 + $0x48] sm:$0xff]  ;;  %v148_v2 = vld [vmem:[%s1131_s1 + $0x40] sm:$0xff]  ;;  %s1135_s10 = smov (!%p834_p3, %s738_s10), 1 }
   0xc   : > { %745 = vmatpush.msk.msra.mxu0 %vm155_vm0, %v150_v0  ;;  %v841_v3 = vld [vmem:[%s1131_s1 + $0xa8] sm:$0xff]  ;;  %v147_v4 = vld [vmem:[%s1131_s1 + $0x38] sm:$0xff]  ;;  %v850_v5 = vld [vmem:[%s1131_s1 + $0xa0] sm:$0xff]  ;;  %s743_s14 = sshll.u32 %s1135_s10, 3  ;;  %vm151_vm1 = vcmask 687104   ;;  %vm232_vm2 = vcmask 1041408  }
   0xd   : > { %288 = vmatpush.msra.mxu3 %v841_v3  ;;  %212 = vmatpush.msra.mxu1 %v841_v3  ;;  %v856_v6 = vld [vmem:[%s1131_s1 + $0x98] sm:$0xff]  ;;  %v146_v7 = vld [vmem:[%s1131_s1 + $0x30] sm:$0xff]  ;;  %v145_v8 = vld [vmem:[%s1131_s1 + $0x28] sm:$0xff]  ;;  %s134_s25 = scalar_lea.vmem %s1130_s0, %s743_s14  ;;  %vm202_vm3 = vcmask 654336   ;;  %vm228_vm4 = vcmask 80896   ;;  %s138_s7 = scalar_lea.vmem %s1132_s2, %s743_s14  ;;  %vm683_vm12 = vcmask 56320  }
   0xe   : > { %165 = vmatpush.msra.mxu0 %v149_v1  ;;  %v868_v9 = vld [vmem:[%s1131_s1 + $0x90] sm:$0xff]  ;;  %v878_v10 = vld [vmem:[%s1131_s1 + $0x88] sm:$0xff]  ;;  %v144_v11 = vld [vmem:[%s1131_s1 + $0x20] sm:$0xff] }
   0xf   : > { %289 = vmatpush.msra.mxu3 %v850_v5  ;;  %213 = vmatpush.msra.mxu1 %v850_v5  ;;  %v890_v12 = vld [vmem:[%s1131_s1 + $0x80] sm:$0xff]  ;;  %v143_v13 = vld [vmem:[%s1131_s1 + $0x18] sm:$0xff]  ;;  %v142_v15 = vld [vmem:[%s1131_s1 + $0x10] sm:$0xff] }
  0x10   : > { %166 = vmatpush.msra.mxu0 %v148_v2  ;;  %v901_v14 = vld [vmem:[%s1131_s1 + $0x78] sm:$0xff]  ;;  %v911_v16 = vld [vmem:[%s1131_s1 + $0x70] sm:$0xff]  ;;  %v141_v17 = vld [vmem:[%s1131_s1 + $0x8] sm:$0xff] }
  0x11   : > { %290 = vmatpush.msra.mxu3 %v856_v6  ;;  %214 = vmatpush.msra.mxu1 %v856_v6  ;;  %v926_v18 = vld [vmem:[%s1131_s1 + $0x68] sm:$0xff]  ;;  %v140_v19 = vld [vmem:[%s1131_s1] sm:$0xff]  ;;  %v955_v22 = vld [vmem:[%s1131_s1 + $0xb8] sm:$0x3] }
  0x12   : > { %167 = vmatpush.msra.mxu0 %v147_v4  ;;  %v139_v20 = vld [vmem:[%s134_s25] sm:$0xff]  ;;  %748 = vmatpush.msk.msra.mxu2 %vm232_vm2, %v955_v22  ;;  %v782_v23 = vld [vmem:[%s1131_s1 + $0x58] ss:$0 sm:$0xff]  ;;  %v783_v24 = vld [vmem:[%s1131_s1 + $0x59] ss:$0 sm:$0xff] }
  0x13   : > { %291 = vmatpush.msra.mxu3 %v868_v9  ;;  %215 = vmatpush.msra.mxu1 %v868_v9  ;;  %v936_v21 = vld [vmem:[%s1131_s1 + $0x60] sm:$0xff]  ;;  %v784_v30 = vld [vmem:[%s1131_s1 + $0x5b] ss:$0 sm:$0xff]  ;;  %v785_v33 = vld [vmem:[%s1131_s1 + $0x5e] ss:$0 sm:$0xff] }
  0x14   : > { %168 = vmatpush.msra.mxu0 %v146_v7  ;;  %v998_v36 = vld [vmem:[%s1131_s1 + $0xb0] sm:$0xff]  ;;  %v1022_v37 = vld [vmem:[%s1131_s1 + $0xba] ss:$0 sm:$0xff]  ;;  %v788_v50 = vld [vmem:[%s1131_s1 + $0x5d] ss:$0 sm:$0xff] }
  0x15   : > { %292 = vmatpush.msra.mxu3 %v878_v10  ;;  %216 = vmatpush.msra.mxu1 %v878_v10  ;;  %v787_v46 = vld [vmem:[%s1131_s1 + $0x5a] ss:$0 sm:$0xff]  ;;  %v1066_v53 = vld [vmem:[%s1131_s1 + $0xbb] ss:$0 sm:$0xff]  ;;  %v1072_v56 = vld [vmem:[%s1131_s1 + $0xbc] ss:$0 sm:$0xff] }
  0x16   : > { %169 = vmatpush.msra.mxu0 %v145_v8  ;;  %251 = vmatpush.msra.mxu2 %v998_v36 }
  0x17   : > { %293 = vmatpush.msra.mxu3 %v890_v12  ;;  %217 = vmatpush.msra.mxu1 %v890_v12 }
  0x18   : > { %170 = vmatpush.msra.mxu0 %v144_v11  ;;  %751 = vmatpush.msk.msrb.mxu2 %vm232_vm2, %v955_v22 }
  0x19   : > { %294 = vmatpush.msra.mxu3 %v901_v14  ;;  %218 = vmatpush.msra.mxu1 %v901_v14 }
  0x1a   : > { %171 = vmatpush.msra.mxu0 %v143_v13  ;;  %321 = vmatpush.msrb.mxu2 %v998_v36  ;;  %v1092_v13 = vld [vmem:[%s1131_s1 + $0xbd] ss:$0 sm:$0xff] }
  0x1b   : > { %295 = vmatpush.msra.mxu3 %v911_v16  ;;  %219 = vmatpush.msra.mxu1 %v911_v16 }
  0x1c   : > { %172 = vmatpush.msra.mxu0 %v142_v15 }
  0x1d   : > { %296 = vmatpush.msra.mxu3 %v926_v18  ;;  %220 = vmatpush.msra.mxu1 %v926_v18 }
  0x1e   : > { %173 = vmatpush.msra.mxu0 %v141_v17 }
  0x1f   : > { %297 = vmatpush.msra.mxu3 %v936_v21  ;;  %221 = vmatpush.msra.mxu1 %v936_v21 }
  0x20   : > { %174 = vmatpush.msra.mxu0 %v140_v19 }
  0x21   : > { %746 = vmatmul.msk.f32.vlgmr.msra.gmra.mxu0 %vm151_vm1, %v139_v20  ;;  %424 = vmatpush.msrb.mxu3 %v841_v3 }
  0x22   : > { %757 = vmatpush.msk.msrb.mxu0 %vm232_vm2, %v955_v22  ;;  %754 = vmatpush.msk.msrb.mxu1 %vm232_vm2, %v955_v22 }
  0x23   : > { %425 = vmatpush.msrb.mxu3 %v850_v5 }
  0x24   : > { %457 = vmatpush.msrb.mxu0 %v998_v36  ;;  %389 = vmatpush.msrb.mxu1 %v998_v36 }
  0x25   : > { %426 = vmatpush.msrb.mxu3 %v856_v6 }
  0x26   : > { %760 = vmatpush.msk.msra.mxu0 %vm232_vm2, %v955_v22 }
  0x27   : > { %427 = vmatpush.msrb.mxu3 %v868_v9 }
  0x28   : > { %525 = vmatpush.msra.mxu0 %v998_v36 }
  0x29   : > { %428 = vmatpush.msrb.mxu3 %v878_v10 }
  0x2b   : > { %429 = vmatpush.msrb.mxu3 %v890_v12 }
  0x2d   : > { %430 = vmatpush.msrb.mxu3 %v901_v14 }
  0x2f   : > { %431 = vmatpush.msrb.mxu3 %v911_v16 }
  0x31   : > { %432 = vmatpush.msrb.mxu3 %v926_v18 }
  0x33   : > { %433 = vmatpush.msrb.mxu3 %v936_v21 }
  0x9e   : > { %v969_v25 = vpop.f32.mrf.mxu0 }
  0x9f   : > { %v199_v26 = vadd.f32 %v782_v23, %v969_v25  ;;  %v277_v27 = vadd.f32 %v783_v24, %v969_v25  ;;  %v413_v31 = vadd.f32 %v784_v30, %v969_v25  ;;  %v617_v34 = vadd.f32 %v785_v33, %v969_v25 }
  0xa0   : > { %v345_v48 = vadd.f32 %v787_v46, %v969_v25  ;;  %v549_v51 = vadd.f32 %v788_v50, %v969_v25 }
  0xa1   : > { %v200_v28 = vmax.f32 %v199_v26, 0.0  ;;  %v278_v29 = vmax.f32 %v277_v27, 0.0  ;;  %v414_v32 = vmax.f32 %v413_v31, 0.0  ;;  %v618_v35 = vmax.f32 %v617_v34, 0.0 }
  0xa2   : > { %v346_v49 = vmax.f32 %v345_v48, 0.0  ;;  %v550_v52 = vmax.f32 %v549_v51, 0.0 }
  0xa3   : > { %747 = vmatmul.msk.f32.vlgmr.msra.gmra.mxu1 %vm202_vm3, %v200_v28  ;;  %750 = vmatmul.msk.f32.vlgmr.msra.gmra.mxu3 %vm202_vm3, %v278_v29 }
  0xa4   : > { %628 = vmatpush.msra.mxu3 %v841_v3  ;;  %492 = vmatpush.msra.mxu1 %v841_v3 }
  0xa6   : > { %629 = vmatpush.msra.mxu3 %v850_v5  ;;  %493 = vmatpush.msra.mxu1 %v850_v5 }
  0xa8   : > { %630 = vmatpush.msra.mxu3 %v856_v6  ;;  %494 = vmatpush.msra.mxu1 %v856_v6 }
  0xaa   : > { %631 = vmatpush.msra.mxu3 %v868_v9  ;;  %495 = vmatpush.msra.mxu1 %v868_v9 }
  0xab   : > { %756 = vmatmul.msk.f32.vlgmr.msrb.gmra.mxu3 %vm202_vm3, %v414_v32 }
  0xac   : > { %632 = vmatpush.msra.mxu3 %v878_v10  ;;  %496 = vmatpush.msra.mxu1 %v878_v10 }
  0xae   : > { %633 = vmatpush.msra.mxu3 %v890_v12  ;;  %497 = vmatpush.msra.mxu1 %v890_v12 }
  0xb0   : > { %634 = vmatpush.msra.mxu3 %v901_v14  ;;  %498 = vmatpush.msra.mxu1 %v901_v14 }
  0xb2   : > { %635 = vmatpush.msra.mxu3 %v911_v16  ;;  %499 = vmatpush.msra.mxu1 %v911_v16 }
  0xb4   : > { %636 = vmatpush.msra.mxu3 %v926_v18  ;;  %500 = vmatpush.msra.mxu1 %v926_v18 }
  0xb6   : > { %637 = vmatpush.msra.mxu3 %v936_v21  ;;  %501 = vmatpush.msra.mxu1 %v936_v21 }
  0xb7   : > { %765 = vmatmul.msk.f32.vlgmr.msra.gmra.mxu3 %vm202_vm3, %v618_v35 }
 0x120   : > { %v223_v38 = vpop.f32.mrf.mxu1 }
 0x121   : > { %v224_v39 = vadd.f32 %v1022_v37, %v223_v38 }
 0x123   : > { %v226_v40 = vmax.f32 %v224_v39, 0.0 }
 0x125   : > { %749 = vmatmul.msk.f32.vlgmr.msra.gmra.mxu2 %vm228_vm4, %v226_v40 }
 0x126   : > { %356 = vmatpush.msra.mxu2 %v841_v3  ;;  %v299_v41 = vpop.f32.mrf.mxu3 }
 0x127   : > { %v300_v42 = vadd.f32 %v1022_v37, %v299_v41 }
 0x128   : > { %357 = vmatpush.msra.mxu2 %v850_v5 }
 0x129   : > { %v302_v43 = vmax.f32 %v300_v42, 0.0 }
 0x12a   : > { %358 = vmatpush.msra.mxu2 %v856_v6 }
 0x12c   : > { %359 = vmatpush.msra.mxu2 %v868_v9 }
 0x12d   : > { %752 = vmatmul.msk.f32.vlgmr.msrb.gmra.mxu2 %vm228_vm4, %v302_v43 }
 0x12e   : > { %360 = vmatpush.msra.mxu2 %v878_v10  ;;  %v435_v44 = vpop.f32.mrf.mxu3 }
 0x12f   : > { %v436_v45 = vadd.f32 %v1022_v37, %v435_v44 }
 0x130   : > { %361 = vmatpush.msra.mxu2 %v890_v12 }
 0x131   : > { %v438_v47 = vmax.f32 %v436_v45, 0.0 }
 0x132   : > { %362 = vmatpush.msra.mxu2 %v901_v14 }
 0x133   : > { %758 = vmatmul.msk.f32.vlgmr.msrb.gmra.mxu0 %vm228_vm4, %v438_v47 }
 0x134   : > { %363 = vmatpush.msra.mxu2 %v911_v16  ;;  %763 = vmatpush.msk.msrb.mxu0 %vm232_vm2, %v955_v22 }
 0x136   : > { %364 = vmatpush.msra.mxu2 %v926_v18  ;;  %593 = vmatpush.msrb.mxu0 %v998_v36 }
 0x138   : > { %365 = vmatpush.msra.mxu2 %v936_v21 }
 0x139   : > { %753 = vmatmul.msk.f32.vlgmr.msra.gmra.mxu2 %vm202_vm3, %v346_v49 }
 0x13a   : > { %560 = vmatpush.msrb.mxu2 %v841_v3  ;;  %v639_v32 = vpop.f32.mrf.mxu3 }
 0x13b   : > { %v640_v33 = vadd.f32 %v1022_v37, %v639_v32 }
 0x13c   : > { %561 = vmatpush.msrb.mxu2 %v850_v5 }
 0x13d   : > { %v642_v34 = vmax.f32 %v640_v33, 0.0 }
 0x13e   : > { %562 = vmatpush.msrb.mxu2 %v856_v6 }
 0x140   : > { %563 = vmatpush.msrb.mxu2 %v868_v9  ;;  %v791_v9 = vld [vmem:[%s1131_s1 + $0x5c] ss:$0 sm:$0xff] }
 0x142   : > { %564 = vmatpush.msrb.mxu2 %v878_v10  ;;  %v481_v10 = vadd.f32 %v791_v9, %v969_v25 }
 0x144   : > { %565 = vmatpush.msrb.mxu2 %v890_v12  ;;  %v482_v11 = vmax.f32 %v481_v10, 0.0  ;;  %v801_v12 = vmov 0  }
 0x145   : > { %779 = vset.pattern.permute.xlu0 %v801_v12  ;;  %780 = vset.pattern.permute.xlu1 %v801_v12 }
 0x146   : > { %566 = vmatpush.msrb.mxu2 %v901_v14  ;;  %781 = vset.pattern.permute.xlu2 %v801_v12 }
 0x148   : > { %567 = vmatpush.msrb.mxu2 %v911_v16 }
 0x14a   : > { %568 = vmatpush.msrb.mxu2 %v926_v18 }
 0x14c   : > { %569 = vmatpush.msrb.mxu2 %v936_v21 }
 0x14d   : > { %762 = vmatmul.msk.f32.vlgmr.msrb.gmra.mxu2 %vm202_vm3, %v550_v52 }
 0x1a8   : > { %v253_v54 = vpop.f32.mrf.mxu2 }
 0x1a9   : > { %v254_v55 = vadd.f32 %v1066_v53, %v253_v54 }
 0x1ab   : > { %v256_v57 = vmax.f32 %v254_v55, 0.0 }
 0x1ad   : > { %v258_v58 = vmul.f32 %v1072_v56, %v256_v57 }
 0x1af   : > { %v259_v59 = vsel %vm228_vm4, %v258_v58, 0.0 }
 0x1b0   : > { %v323_v60 = vpop.f32.mrf.mxu2  ;;  %v459_v61 = vpop.f32.mrf.mxu0  ;;  %260 = vadd.xlane.f32.xlu0 %v259_v59 }
 0x1b1   : > { %v324_v62 = vadd.f32 %v1066_v53, %v323_v60  ;;  %v460_v63 = vadd.f32 %v1066_v53, %v459_v61 }
 0x1b3   : > { %v326_v0 = vmax.f32 %v324_v62, 0.0  ;;  %v462_v1 = vmax.f32 %v460_v63, 0.0 }
 0x1b5   : > { %v463_v2 = vmul.f32 %v1072_v56, %v462_v1  ;;  %v327_v3 = vmul.f32 %v1072_v56, %v326_v0 }
 0x1b7   : > { %v464_v4 = vsel %vm228_vm4, %v463_v2, 0.0  ;;  %v328_v5 = vsel %vm228_vm4, %v327_v3, 0.0  ;;  %v195_v3 = vlaneseq }
 0x1b8   : > { %465 = vadd.xlane.f32.xlu2 %v464_v4  ;;  %329 = vadd.xlane.f32.xlu1 %v328_v5 }
 0x1b9   : > { %v196_v4 = vand.u32 127, %v195_v3 }
 0x1bb   : > { %vm333_vm5 = vcmp.eq.s32.totalorder %v196_v4, 1  ;;  %vm265_vm6 = vcmp.eq.s32.totalorder %v196_v4, 0  ;;  %vm401_vm7 = vcmp.eq.s32.totalorder %v196_v4, 2  ;;  %vm469_vm8 = vcmp.eq.s32.totalorder %v196_v4, 3 }
 0x1bc   : > { %v367_v6 = vpop.f32.mrf.mxu2  ;;  %vm537_vm9 = vcmp.eq.s32.totalorder %v196_v4, 4  ;;  %vm605_vm10 = vcmp.eq.s32.totalorder %v196_v4, 5  ;;  %vm673_vm11 = vcmp.eq.s32.totalorder %v196_v4, 6 }
 0x1bd   : > { %v368_v7 = vadd.f32 %v1022_v37, %v367_v6 }
 0x1bf   : > { %v370_v8 = vmax.f32 %v368_v7, 0.0 }
 0x1c1   : > { %755 = vmatmul.msk.f32.vlgmr.msrb.gmra.mxu1 %vm228_vm4, %v370_v8 }
 0x1c9   : > { %759 = vmatmul.msk.f32.vlgmr.msra.gmra.mxu1 %vm202_vm3, %v482_v11 }
 0x1d0   : > { %v571_v29 = vpop.f32.mrf.mxu2 }
 0x1d1   : > { %v572_v30 = vadd.f32 %v1022_v37, %v571_v29 }
 0x1d3   : > { %v574_v31 = vmax.f32 %v572_v30, 0.0 }
 0x223   : > { %v261_v14 = vpop.xlane.xlu0 %260 }
 0x224   : > { %v263_v15 = vadd.f32 %v1092_v13, %v261_v14 }
 0x226   : > { %v264_v16 = vmax.f32 %v263_v15, 0.0 }
 0x228   : > { %270 = vperm.xlu0 %779, %v264_v16  }
 0x22b   : > { %v330_v17 = vpop.xlane.xlu1 %329  ;;  %v466_v35 = vpop.xlane.xlu2 %465 }
 0x22c   : > { %v331_v18 = vadd.f32 %v1092_v13, %v330_v17  ;;  %v467_v52 = vadd.f32 %v1092_v13, %v466_v35 }
 0x22e   : > { %v332_v19 = vmax.f32 %v331_v18, 0.0  ;;  %v468_v55 = vmax.f32 %v467_v52, 0.0 }
 0x230   : > { %338 = vperm.xlu1 %780, %v332_v19  }
 0x23e   : > { %v391_v20 = vpop.f32.mrf.mxu1 }
 0x23f   : > { %v392_v21 = vadd.f32 %v1066_v53, %v391_v20 }
 0x241   : > { %v394_v23 = vmax.f32 %v392_v21, 0.0 }
 0x243   : > { %v395_v24 = vmul.f32 %v1072_v56, %v394_v23 }
 0x245   : > { %v396_v25 = vsel %vm228_vm4, %v395_v24, 0.0 }
 0x246   : > { %v503_v26 = vpop.f32.mrf.mxu1  ;;  %397 = vadd.xlane.f32.xlu2 %v396_v25 }
 0x247   : > { %v504_v27 = vadd.f32 %v1022_v37, %v503_v26 }
 0x249   : > { %v506_v28 = vmax.f32 %v504_v27, 0.0 }
 0x24b   : > { %761 = vmatmul.msk.f32.vlgmr.msra.gmra.mxu0 %vm228_vm4, %v506_v28 }
 0x24c   : > { %766 = vmatpush.msk.msra.mxu0 %vm232_vm2, %v955_v22 }
 0x24e   : > { %661 = vmatpush.msra.mxu0 %v998_v36 }
 0x253   : > { %764 = vmatmul.msk.f32.vlgmr.msrb.gmra.mxu0 %vm228_vm4, %v574_v31 }
 0x25b   : > { %767 = vmatmul.msk.f32.vlgmr.msra.gmra.mxu0 %vm228_vm4, %v642_v34 }
 0x29a   : > { %v271_v58 = vpop.permute.xlu0 %270 }
 0x29b   : > { %v273_v7 = vsel %vm265_vm6, %v271_v58, 0.0 }
 0x2a2   : > { %v339_v57 = vpop.permute.xlu1 %338 }
 0x2a3   : > { %v341_v6 = vsel %vm333_vm5, %v339_v57, 0.0 }
 0x2a4   : > { %v342_v9 = vadd.f32 %v341_v6, %v273_v7 }
 0x2b9   : > { %v398_v38 = vpop.xlane.xlu2 %397 }
 0x2ba   : > { %v399_v39 = vadd.f32 %v1092_v13, %v398_v38 }
 0x2bc   : > { %v400_v40 = vmax.f32 %v399_v39, 0.0 }
 0x2be   : > { %406 = vperm.xlu2 %781, %v400_v40  }
 0x2c8   : > { %v527_v22 = vpop.f32.mrf.mxu0 }
 0x2c9   : > { %v528_v41 = vadd.f32 %v1066_v53, %v527_v22 }
 0x2cb   : > { %v530_v42 = vmax.f32 %v528_v41, 0.0 }
 0x2cd   : > { %v531_v36 = vmul.f32 %v1072_v56, %v530_v42 }
 0x2cf   : > { %v532_v43 = vsel %vm228_vm4, %v531_v36, 0.0 }
 0x2d0   : > { %v595_v44 = vpop.f32.mrf.mxu0  ;;  %533 = vadd.xlane.f32.xlu1 %v532_v43 }
 0x2d1   : > { %v596_v37 = vadd.f32 %v1066_v53, %v595_v44 }
 0x2d3   : > { %v598_v45 = vmax.f32 %v596_v37, 0.0 }
 0x2d5   : > { %v599_v46 = vmul.f32 %v1072_v56, %v598_v45 }
 0x2d7   : > { %v600_v47 = vsel %vm228_vm4, %v599_v46, 0.0 }
 0x2d8   : > { %v663_v48 = vpop.f32.mrf.mxu0  ;;  %601 = vadd.xlane.f32.xlu0 %v600_v47 }
 0x2d9   : > { %v664_v49 = vadd.f32 %v1066_v53, %v663_v48 }
 0x2db   : > { %v666_v50 = vmax.f32 %v664_v49, 0.0 }
 0x2dd   : > { %v667_v51 = vmul.f32 %v1072_v56, %v666_v50 }
 0x2df   : > { %v668_v54 = vsel %vm228_vm4, %v667_v51, 0.0 }
 0x2e7   : > { %669 = vadd.xlane.f32.xlu2 %v668_v54 }
 0x2e9   : > { %474 = vperm.xlu1 %780, %v468_v55  }
 0x318   : > { %v407_v56 = vpop.permute.xlu2 %406 }
 0x319   : > { %v409_v8 = vsel %vm401_vm7, %v407_v56, 0.0 }
 0x31a   : > { %v410_v12 = vadd.f32 %v409_v8, %v342_v9 }
 0x343   : > { %v534_v59 = vpop.xlane.xlu1 %533 }
 0x344   : > { %v535_v60 = vadd.f32 %v1092_v13, %v534_v59 }
 0x346   : > { %v536_v61 = vmax.f32 %v535_v60, 0.0 }
 0x348   : > { %542 = vperm.xlu2 %781, %v536_v61  }
 0x34b   : > { %v602_v62 = vpop.xlane.xlu0 %601 }
 0x34c   : > { %v603_v53 = vadd.f32 %v1092_v13, %v602_v62 }
 0x34e   : > { %v604_v63 = vmax.f32 %v603_v53, 0.0 }
 0x350   : > { %610 = vperm.xlu1 %780, %v604_v63  }
 0x35a   : > { %v670_v0 = vpop.xlane.xlu2 %669 }
 0x35b   : > { %v671_v1 = vadd.f32 %v1092_v13, %v670_v0  ;;  %v475_v5 = vpop.permute.xlu1 %474 }
 0x35c   : > { %v477_v11 = vsel %vm469_vm8, %v475_v5, 0.0 }
 0x35d   : > { %v672_v2 = vmax.f32 %v671_v1, 0.0  ;;  %v478_v15 = vadd.f32 %v477_v11, %v410_v12 }
 0x35f   : > { %678 = vperm.xlu0 %779, %v672_v2  }
 0x3a2   : > { %v543_v10 = vpop.permute.xlu2 %542 }
 0x3a3   : > { %v545_v14 = vsel %vm537_vm9, %v543_v10, 0.0 }
 0x3a4   : > { %v546_v17 = vadd.f32 %v545_v14, %v478_v15 }
 0x3c2   : > { %v611_v13 = vpop.permute.xlu1 %610 }
 0x3c3   : > { %v613_v16 = vsel %vm605_vm10, %v611_v13, 0.0 }
 0x3c4   : > { %v614_v18 = vadd.f32 %v613_v16, %v546_v17 }
 0x3d1   : > { %v679_v19 = vpop.permute.xlu0 %678 }
 0x3d2   : > { %v681_v20 = vsel %vm673_vm11, %v679_v19, 0.0 }
 0x3d3   : > { %v682_v21 = vadd.f32 %v681_v20, %v614_v18 }
 0x3d5   : > { %684 = vst.msk [vmem:[%s138_s7] sm:$0xff] %vm683_vm12, %v682_v21 }
 0x3d6 PF: > { %s12_s9 = sadd.s32 1, %s799_s9  }
 0x3d7   : > { %p9_p4 = scmp.ge.s32.totalorder %s12_s9, 4  }
 0x3d9   :  { %11 = sbr.rel (!%p9_p4) target bundleno = 1 (0x1), region = 58 }

</bundles_post_ra>
